<compile_context>
chip_gen: v7x
topology: tpu7x:2x2x1
jax: 0.10.0
libtpu: 0.0.40
codegen_flags: <defaults>
</compile_context>

<pallas_src>
import functools

import jax
import jax.numpy as jnp
from jax.experimental import pallas as pl
from jax.experimental.pallas import tpu as pltpu

DIM = 32            # hidden width fixed by the module
K_PAD = 128         # contraction-dim padding for the packed weight slab
C_PAD = 128         # lane-padded output/class dimension
BN_EPS = 1e-5
NEG_BIG = -1e30     # bias for padded logit columns (exp -> 0 in softmax)

# Slice indices into the packed (8, 128, 128) bf16 weight slab.
_W1A, _W1B, _W2A, _W2B, _W3A, _W3B, _WF1, _WF2 = range(8)
# Row indices into the packed (16, 128) f32 vector slab.
_B1A, _B1B, _BN1S, _BN1T = 0, 1, 2, 3
_B2A, _B2B, _BN2S, _BN2T = 4, 5, 6, 7
_B3A, _B3B, _BN3S, _BN3T = 8, 9, 10, 11
_BF1, _BF2 = 12, 13
V_ROWS = 16


def ginconvnet_kernel(x_ref, adj_ref, w_ref, v_ref, out_ref):
    adj = adj_ref[...]          # (N, N) bf16; (1 + eps) * I already folded in
    h = x_ref[...]              # (N, 128) bf16, feature-padded, pre-cast

    def vec(i):                 # (1, 128) f32 row of the vector slab (free view)
        return v_ref[i:i + 1, :]

    def gin_block(h_bf16, wi, vi):
        # GIN aggregation: (1+eps)*h_i + sum_j h_j  ==  A_hat @ h
        agg = jnp.dot(adj, h_bf16, preferred_element_type=jnp.float32)
        # MLP: Linear -> ReLU -> Linear
        t = jnp.dot(agg.astype(jnp.bfloat16), w_ref[wi],
                    preferred_element_type=jnp.float32) + vec(vi)
        t = jnp.maximum(t, 0.0)
        t = jnp.dot(t.astype(jnp.bfloat16), w_ref[wi + 1],
                    preferred_element_type=jnp.float32) + vec(vi + 1)
        # outer ReLU, then folded eval-mode BatchNorm1d (scale / shift)
        t = jnp.maximum(t, 0.0)
        t = t * vec(vi + 2) + vec(vi + 3)
        return t.astype(jnp.bfloat16)

    h = gin_block(h, _W1A, _B1A)
    h = gin_block(h, _W2A, _B2A)
    h = gin_block(h, _W3A, _B3A)

    # fc1 + ReLU.
    t = jnp.dot(h, w_ref[_WF1], preferred_element_type=jnp.float32) + vec(_BF1)
    t = jnp.maximum(t, 0.0)

    # TODO(synk): training-mode dropout (p=0.5) and batch-statistics BatchNorm
    # are not implemented; eval semantics (identity dropout, running-stats BN).

    # fc2 (lane-padded to C_PAD; padded columns carry bias NEG_BIG).
    z = jnp.dot(t.astype(jnp.bfloat16), w_ref[_WF2],
                preferred_element_type=jnp.float32) + vec(_BF2)

    # Numerically-stable log_softmax (padded cols contribute exp(~-1e30) = 0).
    m = jnp.max(z, axis=-1, keepdims=True)
    s = z - m
    lse = jnp.log(jnp.sum(jnp.exp(s), axis=-1, keepdims=True))
    out_ref[...] = s - lse


def _vmem_full(shape):
    nd = len(shape)
    return pl.BlockSpec(shape, lambda: (0,) * nd,
                        memory_space=pltpu.MemorySpace.VMEM)


def pack_params(w1a, b1a, w1b, b1b, bn1s, bn1t,
                w2a, b2a, w2b, b2b, bn2s, bn2t,
                w3a, b3a, w3b, b3b, bn3s, bn3t,
                wf1, bf1, wf2, bf2):
    """One-time parameter packing (hoisted out of the per-call path).

    Returns:
      w_slab: (8, 128, 128) bf16 -- zero-padded weights, stored (in, out).
      v_slab: (16, 128) f32 -- biases and folded-BN scale/shift, one per row.
              bf2's padded columns are NEG_BIG (kept in f32, never cast).
    """
    def pad_w(w):
        fi, fo = w.shape
        return jnp.zeros((K_PAD, C_PAD), jnp.float32).at[:fi, :fo].set(w)

    w_slab = jnp.stack([pad_w(w1a), pad_w(w1b), pad_w(w2a), pad_w(w2b),
                        pad_w(w3a), pad_w(w3b), pad_w(wf1), pad_w(wf2)]
                       ).astype(jnp.bfloat16)

    def pad_v(v, fill=0.0):
        v = jnp.asarray(v, jnp.float32).reshape(-1)
        return jnp.full((C_PAD,), fill, jnp.float32).at[:v.shape[0]].set(v)

    rows = [pad_v(b1a), pad_v(b1b), pad_v(bn1s), pad_v(bn1t),
            pad_v(b2a), pad_v(b2b), pad_v(bn2s), pad_v(bn2t),
            pad_v(b3a), pad_v(b3b), pad_v(bn3s), pad_v(bn3t),
            pad_v(bf1), pad_v(bf2, NEG_BIG)]
    rows += [jnp.zeros((C_PAD,), jnp.float32)] * (V_ROWS - len(rows))
    v_slab = jnp.stack(rows)
    return w_slab, v_slab


@functools.partial(jax.jit, static_argnames="num_classes")
def ginconvnet_forward(x, adj_bf16, w_slab, v_slab, *, num_classes):
    """Forward pass. adj_bf16 / w_slab / v_slab are precomputed (hoisted)."""
    n, f_in = x.shape
    # Lane-pad node features to 128 and pre-cast to bf16 (fuses into this jit;
    # the kernel then contains no avoidable input casts on the matmul chain).
    x_p = jnp.zeros((n, C_PAD), jnp.bfloat16).at[:, :f_in].set(
        x.astype(jnp.bfloat16))

    operands = (x_p, adj_bf16, w_slab, v_slab)

    # Advisory cost estimate for the XLA scheduler.
    flops = 2 * n * (3 * n * C_PAD + 8 * K_PAD * C_PAD)
    bytes_accessed = sum(int(a.size) * a.dtype.itemsize for a in operands) \
        + n * C_PAD * 4
    cost = pl.CostEstimate(flops=int(flops),
                           transcendentals=int(n * C_PAD + n),
                           bytes_accessed=int(bytes_accessed))

    out = pl.pallas_call(
        ginconvnet_kernel,
        out_shape=jax.ShapeDtypeStruct((n, C_PAD), jnp.float32),
        in_specs=[_vmem_full(a.shape) for a in operands],
        out_specs=_vmem_full((n, C_PAD)),
        compiler_params=pltpu.CompilerParams(dimension_semantics=()),
        cost_estimate=cost,
    )(*operands)
    # TODO(synk): for batched multi-graph workloads add a leading "parallel"
    # grid axis (row-stacked graphs / block-diagonal adjacency) so both v7x
    # TensorCores are used and the MXU sees >=128 activation rows per matmul.
    return out[:, :num_classes]


def build_gin_adj(edge_index, num_nodes, eps=0.0):
    """Dense GIN aggregation operator A_hat = A + (1+eps) I, precomputed once.

    A[dst, src] counts edges (PyG sum aggregation: multi-edges accumulate).
    """
    src = edge_index[0]
    dst = edge_index[1]
    a = jnp.zeros((num_nodes, num_nodes), jnp.float32)
    a = a.at[dst, src].add(1.0)
    a = a + (1.0 + eps) * jnp.eye(num_nodes, dtype=jnp.float32)
    return a.astype(jnp.bfloat16)


def init_linear(key, fan_in, fan_out):
    """PyTorch-style Linear init, weight stored as (in, out), bias as (out,)."""
    kw, kb = jax.random.split(key)
    bound = 1.0 / jnp.sqrt(jnp.float32(fan_in))
    w = jax.random.uniform(kw, (fan_in, fan_out), jnp.float32, -bound, bound)
    b = jax.random.uniform(kb, (fan_out,), jnp.float32, -bound, bound)
    return w, b


def init_bn(key, dim):
    """Eval-mode BatchNorm1d folded into per-channel scale / shift."""
    kg, kb, km, kv = jax.random.split(key, 4)
    gamma = 1.0 + 0.1 * jax.random.normal(kg, (dim,), jnp.float32)
    beta = 0.1 * jax.random.normal(kb, (dim,), jnp.float32)
    rmean = 0.1 * jax.random.normal(km, (dim,), jnp.float32)
    rvar = jnp.abs(1.0 + 0.1 * jax.random.normal(kv, (dim,), jnp.float32))
    scale = gamma / jnp.sqrt(rvar + BN_EPS)
    shift = beta - rmean * scale
    return scale, shift


if __name__ == "__main__":
    key = jax.random.PRNGKey(0)
    (k_x, k_e, k_n1a, k_n1b, k_bn1, k_n2a, k_n2b, k_bn2,
     k_n3a, k_n3b, k_bn3, k_fc) = jax.random.split(key, 12)
    k_fc1, k_fc2 = jax.random.split(k_fc)

    num_nodes = 32
    num_features = 16
    num_classes = 8
    num_edges = 64

    x = jax.random.normal(k_x, (num_nodes, num_features), jnp.float32)
    edge_index = jax.random.randint(k_e, (2, num_edges), 0, num_nodes)

    w1a, b1a = init_linear(k_n1a, num_features, DIM)
    w1b, b1b = init_linear(k_n1b, DIM, DIM)
    bn1s, bn1t = init_bn(k_bn1, DIM)
    w2a, b2a = init_linear(k_n2a, DIM, DIM)
    w2b, b2b = init_linear(k_n2b, DIM, DIM)
    bn2s, bn2t = init_bn(k_bn2, DIM)
    w3a, b3a = init_linear(k_n3a, DIM, DIM)
    w3b, b3b = init_linear(k_n3b, DIM, DIM)
    bn3s, bn3t = init_bn(k_bn3, DIM)
    wf1, bf1 = init_linear(k_fc1, DIM, DIM)
    wf2, bf2 = init_linear(k_fc2, DIM, num_classes)

    # Hoisted, one-time preparation (outside the per-call forward path).
    adj_bf16 = build_gin_adj(edge_index, num_nodes)
    w_slab, v_slab = pack_params(
        w1a, b1a, w1b, b1b, bn1s, bn1t,
        w2a, b2a, w2b, b2b, bn2s, bn2t,
        w3a, b3a, w3b, b3b, bn3s, bn3t,
        wf1, bf1, wf2, bf2)
    jax.block_until_ready((adj_bf16, w_slab, v_slab))

    out = ginconvnet_forward(x, adj_bf16, w_slab, v_slab,
                             num_classes=num_classes)
    jax.block_until_ready(out)

    assert out.shape == (num_nodes, num_classes)
    # Sanity: log_softmax rows should sum (in prob space) to ~1; padded logit
    # columns were biased to -1e30 so they carry no probability mass.
    row_sums = jnp.sum(jnp.exp(out), axis=-1)
    assert bool(jnp.all(jnp.abs(row_sums - 1.0) < 1e-3))
    assert bool(jnp.all(jnp.isfinite(out)))

    print("KERNEL_OK")
</pallas_src>

<mosaic_0001>
module attributes {stable_mosaic.version = 11 : i64} {
  func.func @ginconvnet_kernel(%arg0: memref<32x128xbf16, #tpu.memory_space<vmem>>, %arg1: memref<32x32xbf16, #tpu.memory_space<vmem>>, %arg2: memref<8x128x128xbf16, #tpu.memory_space<vmem>>, %arg3: memref<16x128xf32, #tpu.memory_space<vmem>>, %arg4: memref<32x128xf32, #tpu.memory_space<vmem>>) attributes {dimension_semantics = [], scalar_prefetch = 0 : i64, scratch_operands = 0 : i64, tpu.core_type = #tpu.core_type<tc>} {
    %c0 = arith.constant 0 : index
    %c0_0 = arith.constant 0 : index
    %0 = vector.load %arg1[%c0, %c0_0] : memref<32x32xbf16, #tpu.memory_space<vmem>>, vector<32x32xbf16>
    %c0_1 = arith.constant 0 : index
    %c0_2 = arith.constant 0 : index
    %1 = vector.load %arg0[%c0_1, %c0_2] : memref<32x128xbf16, #tpu.memory_space<vmem>>, vector<32x128xbf16>
    %cst = arith.constant dense<0.000000e+00> : vector<32x128xf32>
    %2 = tpu.matmul %0, %1, %cst {dimension_numbers = #tpu.dot_dimension_numbers<[1], [0], [0], [1], [0, 0, 1, 1], [], []>} : vector<32x32xbf16>, vector<32x128xbf16>, vector<32x128xf32> -> vector<32x128xf32>
    %3 = arith.truncf %2 : vector<32x128xf32> to vector<32x128xbf16>
    %c0_3 = arith.constant 0 : index
    %c0_4 = arith.constant 0 : index
    %c0_5 = arith.constant 0 : index
    %4 = vector.load %arg2[%c0_3, %c0_4, %c0_5] : memref<8x128x128xbf16, #tpu.memory_space<vmem>>, vector<1x128x128xbf16>
    %5 = vector.shape_cast %4 : vector<1x128x128xbf16> to vector<128x128xbf16>
    %cst_6 = arith.constant dense<0.000000e+00> : vector<32x128xf32>
    %6 = tpu.matmul %3, %5, %cst_6 {dimension_numbers = #tpu.dot_dimension_numbers<[1], [0], [0], [1], [0, 0, 1, 1], [], []>} : vector<32x128xbf16>, vector<128x128xbf16>, vector<32x128xf32> -> vector<32x128xf32>
    %c0_7 = arith.constant 0 : index
    %c0_8 = arith.constant 0 : index
    %7 = vector.load %arg3[%c0_7, %c0_8] : memref<16x128xf32, #tpu.memory_space<vmem>>, vector<1x128xf32>
    %8 = vector.broadcast %7 : vector<1x128xf32> to vector<32x128xf32>
    %9 = arith.addf %6, %8 : vector<32x128xf32>
    %cst_9 = arith.constant 0.000000e+00 : f32
    %10 = vector.broadcast %cst_9 : f32 to vector<32x128xf32>
    %11 = arith.maximumf %9, %10 : vector<32x128xf32>
    %12 = arith.truncf %11 : vector<32x128xf32> to vector<32x128xbf16>
    %c1 = arith.constant 1 : index
    %c0_10 = arith.constant 0 : index
    %c0_11 = arith.constant 0 : index
    %13 = vector.load %arg2[%c1, %c0_10, %c0_11] : memref<8x128x128xbf16, #tpu.memory_space<vmem>>, vector<1x128x128xbf16>
    %14 = vector.shape_cast %13 : vector<1x128x128xbf16> to vector<128x128xbf16>
    %cst_12 = arith.constant dense<0.000000e+00> : vector<32x128xf32>
    %15 = tpu.matmul %12, %14, %cst_12 {dimension_numbers = #tpu.dot_dimension_numbers<[1], [0], [0], [1], [0, 0, 1, 1], [], []>} : vector<32x128xbf16>, vector<128x128xbf16>, vector<32x128xf32> -> vector<32x128xf32>
    %c1_13 = arith.constant 1 : index
    %c0_14 = arith.constant 0 : index
    %16 = vector.load %arg3[%c1_13, %c0_14] : memref<16x128xf32, #tpu.memory_space<vmem>>, vector<1x128xf32>
    %17 = vector.broadcast %16 : vector<1x128xf32> to vector<32x128xf32>
    %18 = arith.addf %15, %17 : vector<32x128xf32>
    %cst_15 = arith.constant 0.000000e+00 : f32
    %19 = vector.broadcast %cst_15 : f32 to vector<32x128xf32>
    %20 = arith.maximumf %18, %19 : vector<32x128xf32>
    %c2 = arith.constant 2 : index
    %c0_16 = arith.constant 0 : index
    %21 = vector.load %arg3[%c2, %c0_16] : memref<16x128xf32, #tpu.memory_space<vmem>>, vector<1x128xf32>
    %22 = vector.broadcast %21 : vector<1x128xf32> to vector<32x128xf32>
    %23 = arith.mulf %20, %22 : vector<32x128xf32>
    %c3 = arith.constant 3 : index
    %c0_17 = arith.constant 0 : index
    %24 = vector.load %arg3[%c3, %c0_17] : memref<16x128xf32, #tpu.memory_space<vmem>>, vector<1x128xf32>
    %25 = vector.broadcast %24 : vector<1x128xf32> to vector<32x128xf32>
    %26 = arith.addf %23, %25 : vector<32x128xf32>
    %27 = arith.truncf %26 : vector<32x128xf32> to vector<32x128xbf16>
    %cst_18 = arith.constant dense<0.000000e+00> : vector<32x128xf32>
    %28 = tpu.matmul %0, %27, %cst_18 {dimension_numbers = #tpu.dot_dimension_numbers<[1], [0], [0], [1], [0, 0, 1, 1], [], []>} : vector<32x32xbf16>, vector<32x128xbf16>, vector<32x128xf32> -> vector<32x128xf32>
    %29 = arith.truncf %28 : vector<32x128xf32> to vector<32x128xbf16>
    %c2_19 = arith.constant 2 : index
    %c0_20 = arith.constant 0 : index
    %c0_21 = arith.constant 0 : index
    %30 = vector.load %arg2[%c2_19, %c0_20, %c0_21] : memref<8x128x128xbf16, #tpu.memory_space<vmem>>, vector<1x128x128xbf16>
    %31 = vector.shape_cast %30 : vector<1x128x128xbf16> to vector<128x128xbf16>
    %cst_22 = arith.constant dense<0.000000e+00> : vector<32x128xf32>
    %32 = tpu.matmul %29, %31, %cst_22 {dimension_numbers = #tpu.dot_dimension_numbers<[1], [0], [0], [1], [0, 0, 1, 1], [], []>} : vector<32x128xbf16>, vector<128x128xbf16>, vector<32x128xf32> -> vector<32x128xf32>
    %c4 = arith.constant 4 : index
    %c0_23 = arith.constant 0 : index
    %33 = vector.load %arg3[%c4, %c0_23] : memref<16x128xf32, #tpu.memory_space<vmem>>, vector<1x128xf32>
    %34 = vector.broadcast %33 : vector<1x128xf32> to vector<32x128xf32>
    %35 = arith.addf %32, %34 : vector<32x128xf32>
    %cst_24 = arith.constant 0.000000e+00 : f32
    %36 = vector.broadcast %cst_24 : f32 to vector<32x128xf32>
    %37 = arith.maximumf %35, %36 : vector<32x128xf32>
    %38 = arith.truncf %37 : vector<32x128xf32> to vector<32x128xbf16>
    %c3_25 = arith.constant 3 : index
    %c0_26 = arith.constant 0 : index
    %c0_27 = arith.constant 0 : index
    %39 = vector.load %arg2[%c3_25, %c0_26, %c0_27] : memref<8x128x128xbf16, #tpu.memory_space<vmem>>, vector<1x128x128xbf16>
    %40 = vector.shape_cast %39 : vector<1x128x128xbf16> to vector<128x128xbf16>
    %cst_28 = arith.constant dense<0.000000e+00> : vector<32x128xf32>
    %41 = tpu.matmul %38, %40, %cst_28 {dimension_numbers = #tpu.dot_dimension_numbers<[1], [0], [0], [1], [0, 0, 1, 1], [], []>} : vector<32x128xbf16>, vector<128x128xbf16>, vector<32x128xf32> -> vector<32x128xf32>
    %c5 = arith.constant 5 : index
    %c0_29 = arith.constant 0 : index
    %42 = vector.load %arg3[%c5, %c0_29] : memref<16x128xf32, #tpu.memory_space<vmem>>, vector<1x128xf32>
    %43 = vector.broadcast %42 : vector<1x128xf32> to vector<32x128xf32>
    %44 = arith.addf %41, %43 : vector<32x128xf32>
    %cst_30 = arith.constant 0.000000e+00 : f32
    %45 = vector.broadcast %cst_30 : f32 to vector<32x128xf32>
    %46 = arith.maximumf %44, %45 : vector<32x128xf32>
    %c6 = arith.constant 6 : index
    %c0_31 = arith.constant 0 : index
    %47 = vector.load %arg3[%c6, %c0_31] : memref<16x128xf32, #tpu.memory_space<vmem>>, vector<1x128xf32>
    %48 = vector.broadcast %47 : vector<1x128xf32> to vector<32x128xf32>
    %49 = arith.mulf %46, %48 : vector<32x128xf32>
    %c7 = arith.constant 7 : index
    %c0_32 = arith.constant 0 : index
    %50 = vector.load %arg3[%c7, %c0_32] : memref<16x128xf32, #tpu.memory_space<vmem>>, vector<1x128xf32>
    %51 = vector.broadcast %50 : vector<1x128xf32> to vector<32x128xf32>
    %52 = arith.addf %49, %51 : vector<32x128xf32>
    %53 = arith.truncf %52 : vector<32x128xf32> to vector<32x128xbf16>
    %cst_33 = arith.constant dense<0.000000e+00> : vector<32x128xf32>
    %54 = tpu.matmul %0, %53, %cst_33 {dimension_numbers = #tpu.dot_dimension_numbers<[1], [0], [0], [1], [0, 0, 1, 1], [], []>} : vector<32x32xbf16>, vector<32x128xbf16>, vector<32x128xf32> -> vector<32x128xf32>
    %55 = arith.truncf %54 : vector<32x128xf32> to vector<32x128xbf16>
    %c4_34 = arith.constant 4 : index
    %c0_35 = arith.constant 0 : index
    %c0_36 = arith.constant 0 : index
    %56 = vector.load %arg2[%c4_34, %c0_35, %c0_36] : memref<8x128x128xbf16, #tpu.memory_space<vmem>>, vector<1x128x128xbf16>
    %57 = vector.shape_cast %56 : vector<1x128x128xbf16> to vector<128x128xbf16>
    %cst_37 = arith.constant dense<0.000000e+00> : vector<32x128xf32>
    %58 = tpu.matmul %55, %57, %cst_37 {dimension_numbers = #tpu.dot_dimension_numbers<[1], [0], [0], [1], [0, 0, 1, 1], [], []>} : vector<32x128xbf16>, vector<128x128xbf16>, vector<32x128xf32> -> vector<32x128xf32>
    %c8 = arith.constant 8 : index
    %c0_38 = arith.constant 0 : index
    %59 = vector.load %arg3[%c8, %c0_38] : memref<16x128xf32, #tpu.memory_space<vmem>>, vector<1x128xf32>
    %60 = vector.broadcast %59 : vector<1x128xf32> to vector<32x128xf32>
    %61 = arith.addf %58, %60 : vector<32x128xf32>
    %cst_39 = arith.constant 0.000000e+00 : f32
    %62 = vector.broadcast %cst_39 : f32 to vector<32x128xf32>
    %63 = arith.maximumf %61, %62 : vector<32x128xf32>
    %64 = arith.truncf %63 : vector<32x128xf32> to vector<32x128xbf16>
    %c5_40 = arith.constant 5 : index
    %c0_41 = arith.constant 0 : index
    %c0_42 = arith.constant 0 : index
    %65 = vector.load %arg2[%c5_40, %c0_41, %c0_42] : memref<8x128x128xbf16, #tpu.memory_space<vmem>>, vector<1x128x128xbf16>
    %66 = vector.shape_cast %65 : vector<1x128x128xbf16> to vector<128x128xbf16>
    %cst_43 = arith.constant dense<0.000000e+00> : vector<32x128xf32>
    %67 = tpu.matmul %64, %66, %cst_43 {dimension_numbers = #tpu.dot_dimension_numbers<[1], [0], [0], [1], [0, 0, 1, 1], [], []>} : vector<32x128xbf16>, vector<128x128xbf16>, vector<32x128xf32> -> vector<32x128xf32>
    %c9 = arith.constant 9 : index
    %c0_44 = arith.constant 0 : index
    %68 = vector.load %arg3[%c9, %c0_44] : memref<16x128xf32, #tpu.memory_space<vmem>>, vector<1x128xf32>
    %69 = vector.broadcast %68 : vector<1x128xf32> to vector<32x128xf32>
    %70 = arith.addf %67, %69 : vector<32x128xf32>
    %cst_45 = arith.constant 0.000000e+00 : f32
    %71 = vector.broadcast %cst_45 : f32 to vector<32x128xf32>
    %72 = arith.maximumf %70, %71 : vector<32x128xf32>
    %c10 = arith.constant 10 : index
    %c0_46 = arith.constant 0 : index
    %73 = vector.load %arg3[%c10, %c0_46] : memref<16x128xf32, #tpu.memory_space<vmem>>, vector<1x128xf32>
    %74 = vector.broadcast %73 : vector<1x128xf32> to vector<32x128xf32>
    %75 = arith.mulf %72, %74 : vector<32x128xf32>
    %c11 = arith.constant 11 : index
    %c0_47 = arith.constant 0 : index
    %76 = vector.load %arg3[%c11, %c0_47] : memref<16x128xf32, #tpu.memory_space<vmem>>, vector<1x128xf32>
    %77 = vector.broadcast %76 : vector<1x128xf32> to vector<32x128xf32>
    %78 = arith.addf %75, %77 : vector<32x128xf32>
    %79 = arith.truncf %78 : vector<32x128xf32> to vector<32x128xbf16>
    %c6_48 = arith.constant 6 : index
    %c0_49 = arith.constant 0 : index
    %c0_50 = arith.constant 0 : index
    %80 = vector.load %arg2[%c6_48, %c0_49, %c0_50] : memref<8x128x128xbf16, #tpu.memory_space<vmem>>, vector<1x128x128xbf16>
    %81 = vector.shape_cast %80 : vector<1x128x128xbf16> to vector<128x128xbf16>
    %cst_51 = arith.constant dense<0.000000e+00> : vector<32x128xf32>
    %82 = tpu.matmul %79, %81, %cst_51 {dimension_numbers = #tpu.dot_dimension_numbers<[1], [0], [0], [1], [0, 0, 1, 1], [], []>} : vector<32x128xbf16>, vector<128x128xbf16>, vector<32x128xf32> -> vector<32x128xf32>
    %c12 = arith.constant 12 : index
    %c0_52 = arith.constant 0 : index
    %83 = vector.load %arg3[%c12, %c0_52] : memref<16x128xf32, #tpu.memory_space<vmem>>, vector<1x128xf32>
    %84 = vector.broadcast %83 : vector<1x128xf32> to vector<32x128xf32>
    %85 = arith.addf %82, %84 : vector<32x128xf32>
    %cst_53 = arith.constant 0.000000e+00 : f32
    %86 = vector.broadcast %cst_53 : f32 to vector<32x128xf32>
    %87 = arith.maximumf %85, %86 : vector<32x128xf32>
    %88 = arith.truncf %87 : vector<32x128xf32> to vector<32x128xbf16>
    %c7_54 = arith.constant 7 : index
    %c0_55 = arith.constant 0 : index
    %c0_56 = arith.constant 0 : index
    %89 = vector.load %arg2[%c7_54, %c0_55, %c0_56] : memref<8x128x128xbf16, #tpu.memory_space<vmem>>, vector<1x128x128xbf16>
    %90 = vector.shape_cast %89 : vector<1x128x128xbf16> to vector<128x128xbf16>
    %cst_57 = arith.constant dense<0.000000e+00> : vector<32x128xf32>
    %91 = tpu.matmul %88, %90, %cst_57 {dimension_numbers = #tpu.dot_dimension_numbers<[1], [0], [0], [1], [0, 0, 1, 1], [], []>} : vector<32x128xbf16>, vector<128x128xbf16>, vector<32x128xf32> -> vector<32x128xf32>
    %c13 = arith.constant 13 : index
    %c0_58 = arith.constant 0 : index
    %92 = vector.load %arg3[%c13, %c0_58] : memref<16x128xf32, #tpu.memory_space<vmem>>, vector<1x128xf32>
    %93 = vector.broadcast %92 : vector<1x128xf32> to vector<32x128xf32>
    %94 = arith.addf %91, %93 : vector<32x128xf32>
    %cst_59 = arith.constant dense<0xFF800000> : vector<32xf32>
    %95 = vector.multi_reduction <maximumf>, %94, %cst_59 [1] : vector<32x128xf32> to vector<32xf32>
    %96 = vector.shape_cast %95 : vector<32xf32> to vector<32x1xf32>
    %97 = vector.broadcast %96 : vector<32x1xf32> to vector<32x128xf32>
    %98 = arith.subf %94, %97 : vector<32x128xf32>
    %99 = math.exp %98 : vector<32x128xf32>
    %cst_60 = arith.constant dense<0.000000e+00> : vector<32xf32>
    %100 = vector.multi_reduction <add>, %99, %cst_60 [1] : vector<32x128xf32> to vector<32xf32>
    %101 = vector.shape_cast %100 : vector<32xf32> to vector<32x1xf32>
    %102 = math.log %101 : vector<32x1xf32>
    %103 = vector.broadcast %102 : vector<32x1xf32> to vector<32x128xf32>
    %104 = arith.subf %98, %103 : vector<32x128xf32>
    %c0_61 = arith.constant 0 : index
    %c0_62 = arith.constant 0 : index
    %105 = vector.load %arg4[%c0_61, %c0_62] : memref<32x128xf32, #tpu.memory_space<vmem>>, vector<32x128xf32>
    tpu.vector_store %arg4[%c0_61, %c0_62], %104 {strides = array<i32>} : memref<32x128xf32, #tpu.memory_space<vmem>>, vector<32x128xf32>,
    return
  }
}

</mosaic_0001>

<bundles_post_ra>
// kernel: ginconvnet_forward.1
= control target key start
LH: loop header
LB: loop body
LE: loop exit
PB: predicated region body
PF: predicated region fallthrough
CT: control target
= control target key end

     0   :  { %9 = vsyncpa [#allocation3], 0  ;;  %s1793_s15 = smov [#allocation2]   ;;  %s1915_s0 = inlined_call_operand.vmem [shape: bf16[32,128], index: 0, kind: input, shape index: {}]   ;;  %s1916_s1 = inlined_call_operand.vmem [shape: bf16[32,32], index: 1, kind: input, shape index: {}]   ;;  %s1917_s2 = inlined_call_operand.hbm [shape: bf16[8,128,128], index: 2, kind: input, shape index: {}]   ;;  %s1918_s3 = inlined_call_operand.vmem [shape: f32[16,128], index: 3, kind: input, shape index: {}]   ;;  %s1919_s4 = inlined_call_operand.vmem [shape: f32[32,128], index: 4, kind: output, shape index: {}]  }
   0x1   :  { %s19_s16 = sshll.u32 %s1793_s15, 4  ;;  %s1769_s19 = scalar_lea.hbm %s1917_s2, 8192  ;;  %s20_s16 = int_to_ptr.vmem [resolvable:$true] %s19_s16 }
   0x2   :  { %p1770_p0 = scmp.ne.s32.totalorder %s1917_s2, %s1769_s19  ;;  %p1773_p1 = scmp.lt.u32.totalorder %s1769_s19, %s1917_s2 }
   0x4   :  { %p1775_p2 = pnand %p1773_p1, %p1770_p0 }
   0x6   :  { %1778 = shalt.err (!%p1775_p2)
}
   0x7   :  { %s1779_s24 = scalar_lea.vmem %s20_s16, 8192  ;;  %p1784_p4 = scmp.lt.s32.totalorder %s20_s16, %s20_s16 }
   0x8   :  { %p1780_p3 = scmp.ne.s32.totalorder %s20_s16, %s1779_s24  ;;  %p1785_p5 = scmp.lt.s32.totalorder %s1779_s24, %s1779_s24 }
   0xa   :  { %p1786_p6 = por %p1785_p5, %p1784_p4 }
   0xc   :  { %p1787_p7 = pnand %p1786_p6, %p1780_p3 }
   0xe   :  { %1790 = shalt.err (!%p1787_p7)
}
   0xf   :  { %s1794_s25 = smov 64   ;;  %s1795_s26 = smov 4  }
  0x10   :  { %25 = dma.hbm_to_vmem [thread:$0]  %s1917_s2, 8192, %s20_s16, [#allocation3], %s1794_s25, %s1794_s25, %s1795_s26  }
  0x11   :  { %1791 = dma.done.wait [#allocation3], 8192  }
  0x12   :  { %1792 = vsyncadd [#allocation3], 4294959104  ;;  %v1685_v0 = vld [vmem:[%s1915_s0] sm:$0xff]   ;;  %v1686_v1 = vld [vmem:[%s1915_s0 + $0x8] sm:$0xff]   ;;  %vm62_vm0 = vcmask 261120  }
  0x13   :  { %1498 = vmatprep.subr.bf16.mxu0 %v1685_v0  ;;  %v1842_v2 = vld [vmem:[%s1916_s1] sm:$0xff]   ;;  %v1690_v4 = vld [vmem:[#allocation2 + $0x8] sm:$0xff]   ;;  %v1691_v6 = vld [vmem:[#allocation2 + $0x10] sm:$0xff]  }
  0x14   :  { %1499 = vmatpush3.bf16.msra.mxu0 %v1685_v0  ;;  %1502 = vmatprep.mubr.msk.bf16.mxu0 %vm62_vm0, %v1842_v2  ;;  %v1689_v3 = vld [vmem:[#allocation2] sm:$0xff]   ;;  %v1849_v5 = vld [vmem:[%s1916_s1 + $0x8] sm:$0xff]   ;;  %v1692_v7 = vld [vmem:[#allocation2 + $0x18] sm:$0xff]  }
  0x15   :  { %1500 = vmatprep.subr.bf16.mxu0 %v1686_v1  ;;  %1506 = vmatprep.subr.bf16.mxu1 %v1689_v3  ;;  %v1693_v8 = vld [vmem:[#allocation2 + $0x20] sm:$0xff]   ;;  %v1694_v9 = vld [vmem:[#allocation2 + $0x28] sm:$0xff]   ;;  %v1695_v10 = vld [vmem:[#allocation2 + $0x30] sm:$0xff]  }
  0x16   :  { %1507 = vmatpush3.bf16.msra.mxu1 %v1689_v3  ;;  %v1696_v11 = vld [vmem:[#allocation2 + $0x38] sm:$0xff]   ;;  %v1697_v12 = vld [vmem:[#allocation2 + $0x40] sm:$0xff]   ;;  %v1698_v13 = vld [vmem:[#allocation2 + $0x48] sm:$0xff]  }
  0x17   :  { %1508 = vmatprep.subr.bf16.mxu1 %v1690_v4  ;;  %v1699_v14 = vld [vmem:[#allocation2 + $0x50] sm:$0xff]   ;;  %v1700_v15 = vld [vmem:[#allocation2 + $0x58] sm:$0xff]   ;;  %v1701_v16 = vld [vmem:[#allocation2 + $0x60] sm:$0xff]  }
  0x18   :  { %1501 = vmatpush3.bf16.msra.mxu0 %v1686_v1  ;;  %v1702_v17 = vld [vmem:[#allocation2 + $0x68] sm:$0xff]   ;;  %v1703_v24 = vld [vmem:[#allocation2 + $0x70] sm:$0xff]   ;;  %v1704_v25 = vld [vmem:[#allocation2 + $0x78] sm:$0xff]  }
  0x19   :  { %1526 = vmatprep.subr.bf16.mxu0 %v1697_v12  ;;  %v1324_v26 = vld [vmem:[%s1918_s3] ss:$0 sm:$0xff]  ;;  %v1706_v42 = vld [vmem:[#allocation2 + $0x88] sm:$0xff]   ;;  %v1707_v43 = vld [vmem:[#allocation2 + $0x90] sm:$0xff]  }
  0x1a   :  { %1509 = vmatpush3.bf16.msra.mxu1 %v1690_v4  ;;  %v1705_v41 = vld [vmem:[#allocation2 + $0x80] sm:$0xff]   ;;  %v1708_v44 = vld [vmem:[#allocation2 + $0x98] sm:$0xff]   ;;  %v1710_v46 = vld [vmem:[#allocation2 + $0xa8] sm:$0xff]  }
  0x1b   :  { %1503 = vmatmul.mubr.msk.bf16.vlgmr.msra.gmra.mrb[0].mxu0 %vm62_vm0, %v1849_v5  ;;  %1510 = vmatprep.subr.bf16.mxu1 %v1691_v6  ;;  %v1709_v45 = vld [vmem:[#allocation2 + $0xa0] sm:$0xff]   ;;  %v1711_v47 = vld [vmem:[#allocation2 + $0xb0] sm:$0xff]  }
  0x1c   :  { %1527 = vmatpush3.bf16.msra.mxu0 %v1697_v12  ;;  %v1333_v48 = vld [vmem:[%s1918_s3 + $0x1] ss:$0 sm:$0xff]  ;;  %v1342_v52 = vld [vmem:[%s1918_s3 + $0x2] ss:$0 sm:$0xff]  ;;  %v1343_v62 = vld [vmem:[%s1918_s3 + $0x3] ss:$0 sm:$0xff] }
  0x1d   :  { %1528 = vmatprep.subr.bf16.mxu0 %v1698_v13  ;;  %v1713_v12 = vld [vmem:[#allocation2 + $0xc0] sm:$0xff]  }
  0x1e   :  { %1511 = vmatpush3.bf16.msra.mxu1 %v1691_v6 }
  0x1f   :  { %1512 = vmatprep.subr.bf16.mxu1 %v1692_v7 }
  0x20   :  { %1529 = vmatpush3.bf16.msra.mxu0 %v1698_v13  ;;  %v1714_v13 = vld [vmem:[#allocation2 + $0xc8] sm:$0xff]  }
  0x21   :  { %1530 = vmatprep.subr.bf16.mxu0 %v1699_v14 }
  0x22   :  { %1513 = vmatpush3.bf16.msra.mxu1 %v1692_v7 }
  0x23   :  { %1514 = vmatprep.subr.bf16.mxu1 %v1693_v8 }
  0x24   :  { %1531 = vmatpush3.bf16.msra.mxu0 %v1699_v14  ;;  %v1715_v14 = vld [vmem:[#allocation2 + $0xd0] sm:$0xff]  }
  0x25   :  { %1532 = vmatprep.subr.bf16.mxu0 %v1700_v15 }
  0x26   :  { %1515 = vmatpush3.bf16.msra.mxu1 %v1693_v8 }
  0x27   :  { %1516 = vmatprep.subr.bf16.mxu1 %v1694_v9 }
  0x28   :  { %1533 = vmatpush3.bf16.msra.mxu0 %v1700_v15  ;;  %v1716_v15 = vld [vmem:[#allocation2 + $0xd8] sm:$0xff]  }
  0x29   :  { %1534 = vmatprep.subr.bf16.mxu0 %v1701_v16 }
  0x2a   :  { %1517 = vmatpush3.bf16.msra.mxu1 %v1694_v9 }
  0x2b   :  { %1518 = vmatprep.subr.bf16.mxu1 %v1695_v10 }
  0x2c   :  { %1535 = vmatpush3.bf16.msra.mxu0 %v1701_v16  ;;  %v1717_v16 = vld [vmem:[#allocation2 + $0xe0] sm:$0xff]  }
  0x2d   :  { %1536 = vmatprep.subr.bf16.mxu0 %v1702_v17 }
  0x2e   :  { %1519 = vmatpush3.bf16.msra.mxu1 %v1695_v10 }
  0x2f   :  { %1520 = vmatprep.subr.bf16.mxu1 %v1696_v11 }
  0x30   :  { %1537 = vmatpush3.bf16.msra.mxu0 %v1702_v17  ;;  %v1718_v17 = vld [vmem:[#allocation2 + $0xe8] sm:$0xff]  }
  0x31   :  { %1538 = vmatprep.subr.bf16.mxu0 %v1703_v24 }
  0x32   :  { %1521 = vmatpush3.bf16.msra.mxu1 %v1696_v11  ;;  %v1712_v11 = vld [vmem:[#allocation2 + $0xb8] sm:$0xff]  }
  0x34   :  { %1539 = vmatpush3.bf16.msra.mxu0 %v1703_v24  ;;  %v1719_v24 = vld [vmem:[#allocation2 + $0xf0] sm:$0xff]  }
  0x35   :  { %1540 = vmatprep.subr.bf16.mxu0 %v1704_v25 }
  0x38   :  { %1541 = vmatpush3.bf16.msra.mxu0 %v1704_v25  ;;  %v1720_v25 = vld [vmem:[#allocation2 + $0xf8] sm:$0xff]  }
  0x39   :  { %1554 = vmatprep.subr.bf16.mxu0 %v1705_v41 }
  0xee   :  { %v1504_v18 = vpop.f32.mrb[0].mxu0 }
  0xef   :  { %v103_v19 = vpop.f32.mrb[1].mxu0 }
  0xf0   :  { %v1505_v20 = vpop.f32.mrb[2].mxu0 }
  0xf1   :  { %v119_v21 = vpack.c.bf16 %v1505_v20, %v1504_v18  ;;  %v106_v22 = vpop.f32.mrb[3].mxu0 }
  0xf2   :  { %v118_v23 = vpack.c.bf16 %v106_v22, %v103_v19 }
  0xf4   :  { %1522 = vmatprep.mubr.bf16.mxu1 %v118_v23 }
  0xf5   :  { %1523 = vmatmul.mubr.bf16.vlgmr.msra.gmra.mrb[0].mxu1 %v119_v21 }
  0xf6   :  { %1550 = vmatprep.mubr.msk.bf16.mxu1 %vm62_vm0, %v1842_v2 }
 0x1c8   :  { %v1524_v27 = vpop.f32.mrb[0].mxu1 }
 0x1c9   :  { %v232_v28 = vadd.f32 %v1524_v27, %v1324_v26  ;;  %v223_v29 = vpop.f32.mrb[1].mxu1 }
 0x1ca   :  { %v224_v30 = vadd.f32 %v1324_v26, %v223_v29  ;;  %v1525_v31 = vpop.f32.mrb[2].mxu1 }
 0x1cb   :  { %v235_v32 = vadd.f32 %v1525_v31, %v1324_v26  ;;  %v226_v33 = vpop.f32.mrb[3].mxu1  ;;  %v240_v35 = vmax.f32 %v232_v28, 0.0 }
 0x1cc   :  { %v227_v34 = vadd.f32 %v1324_v26, %v226_v33  ;;  %v238_v37 = vmax.f32 %v224_v30, 0.0  ;;  %v1346_v26 = vld [vmem:[%s1918_s3 + $0x4] ss:$0 sm:$0xff] }
 0x1cd   :  { %v241_v36 = vmax.f32 %v235_v32, 0.0 }
 0x1ce   :  { %v239_v38 = vmax.f32 %v227_v34, 0.0 }
 0x1cf   :  { %v243_v39 = vpack.c.bf16 %v241_v36, %v240_v35 }
 0x1d0   :  { %v242_v40 = vpack.c.bf16 %v239_v38, %v238_v37 }
 0x1d2   :  { %1542 = vmatprep.mubr.bf16.mxu0 %v242_v40  ;;  %v1721_v40 = vld [vmem:[#allocation2 + $0x100] sm:$0xff]  }
 0x1d3   :  { %1543 = vmatmul.mubr.bf16.vlgmr.msra.gmra.mrb[4].mxu0 %v243_v39 }
 0x1d4   :  { %1555 = vmatpush3.bf16.msra.mxu0 %v1705_v41  ;;  %v1722_v41 = vld [vmem:[#allocation2 + $0x108] sm:$0xff]  }
 0x1d5   :  { %1556 = vmatprep.subr.bf16.mxu0 %v1706_v42 }
 0x1d8   :  { %1557 = vmatpush3.bf16.msra.mxu0 %v1706_v42  ;;  %v1723_v42 = vld [vmem:[#allocation2 + $0x110] sm:$0xff]  }
 0x1d9   :  { %1558 = vmatprep.subr.bf16.mxu0 %v1707_v43 }
 0x1dc   :  { %1559 = vmatpush3.bf16.msra.mxu0 %v1707_v43  ;;  %v1724_v43 = vld [vmem:[#allocation2 + $0x118] sm:$0xff]  }
 0x1dd   :  { %1560 = vmatprep.subr.bf16.mxu0 %v1708_v44 }
 0x1e0   :  { %1561 = vmatpush3.bf16.msra.mxu0 %v1708_v44  ;;  %v1725_v44 = vld [vmem:[#allocation2 + $0x120] sm:$0xff]  }
 0x1e1   :  { %1562 = vmatprep.subr.bf16.mxu0 %v1709_v45 }
 0x1e4   :  { %1563 = vmatpush3.bf16.msra.mxu0 %v1709_v45  ;;  %v1726_v45 = vld [vmem:[#allocation2 + $0x128] sm:$0xff]  }
 0x1e5   :  { %1564 = vmatprep.subr.bf16.mxu0 %v1710_v46 }
 0x1e8   :  { %1565 = vmatpush3.bf16.msra.mxu0 %v1710_v46  ;;  %v1727_v46 = vld [vmem:[#allocation2 + $0x130] sm:$0xff]  }
 0x1e9   :  { %1566 = vmatprep.subr.bf16.mxu0 %v1711_v47 }
 0x1ec   :  { %1567 = vmatpush3.bf16.msra.mxu0 %v1711_v47  ;;  %v1355_v47 = vld [vmem:[%s1918_s3 + $0x5] ss:$0 sm:$0xff] }
 0x1ed   :  { %1568 = vmatprep.subr.bf16.mxu0 %v1712_v11 }
 0x1f0   :  { %1569 = vmatpush3.bf16.msra.mxu0 %v1712_v11  ;;  %v1729_v11 = vld [vmem:[#allocation2 + $0x140] sm:$0xff]  }
 0x2a6   :  { %v1544_v49 = vpop.f32.mrb[4].mxu0 }
 0x2a7   :  { %v357_v50 = vadd.f32 %v1544_v49, %v1333_v48  ;;  %v348_v51 = vpop.f32.mrb[5].mxu0 }
 0x2a8   :  { %v349_v53 = vadd.f32 %v1333_v48, %v348_v51  ;;  %v1545_v54 = vpop.f32.mrb[6].mxu0  ;;  %v1364_v51 = vld [vmem:[%s1918_s3 + $0x6] ss:$0 sm:$0xff] }
 0x2a9   :  { %v365_v55 = vmax.f32 %v357_v50, 0.0  ;;  %v360_v56 = vadd.f32 %v1545_v54, %v1333_v48  ;;  %v351_v57 = vpop.f32.mrb[7].mxu0 }
 0x2aa   :  { %v363_v58 = vmax.f32 %v349_v53, 0.0  ;;  %v352_v59 = vadd.f32 %v1333_v48, %v351_v57 }
 0x2ab   :  { %v374_v60 = vmul.f32 %v1342_v52, %v365_v55  ;;  %v366_v61 = vmax.f32 %v360_v56, 0.0 }
 0x2ac   :  { %v372_v63 = vmul.f32 %v1342_v52, %v363_v58  ;;  %v364_v0 = vmax.f32 %v352_v59, 0.0 }
 0x2ad   :  { %v375_v1 = vmul.f32 %v1342_v52, %v366_v61  ;;  %v383_v4 = vadd.f32 %v1343_v62, %v374_v60  ;;  %v1365_v61 = vld [vmem:[%s1918_s3 + $0x7] ss:$0 sm:$0xff] }
 0x2ae   :  { %v373_v3 = vmul.f32 %v1342_v52, %v364_v0  ;;  %v381_v7 = vadd.f32 %v1343_v62, %v372_v63 }
 0x2af   :  { %v384_v6 = vadd.f32 %v1343_v62, %v375_v1 }
 0x2b0   :  { %v382_v8 = vadd.f32 %v1343_v62, %v373_v3 }
 0x2b1   :  { %v386_v9 = vpack.c.bf16 %v384_v6, %v383_v4 }
 0x2b2   :  { %v385_v10 = vpack.c.bf16 %v382_v8, %v381_v7 }
 0x2b4   :  { %1546 = vmatprep.subr.bf16.mxu1 %v385_v10 }
 0x2b5   :  { %1547 = vmatpush3.bf16.msra.mxu1 %v385_v10  ;;  %v1728_v10 = vld [vmem:[#allocation2 + $0x138] sm:$0xff]  }
 0x2b6   :  { %1548 = vmatprep.subr.bf16.mxu1 %v386_v9 }
 0x2b9   :  { %1549 = vmatpush3.bf16.msra.mxu1 %v386_v9 }
 0x2ba   :  { %1574 = vmatprep.subr.bf16.mxu1 %v1713_v12 }
 0x2bc   :  { %1551 = vmatmul.mubr.msk.bf16.vlgmr.msra.gmra.mrb[4].mxu1 %vm62_vm0, %v1849_v5 }
 0x2bd   :  { %1575 = vmatpush3.bf16.msra.mxu1 %v1713_v12  ;;  %v1730_v12 = vld [vmem:[#allocation2 + $0x148] sm:$0xff]  }
 0x2be   :  { %1576 = vmatprep.subr.bf16.mxu1 %v1714_v13 }
 0x2c1   :  { %1577 = vmatpush3.bf16.msra.mxu1 %v1714_v13  ;;  %v1731_v13 = vld [vmem:[#allocation2 + $0x150] sm:$0xff]  }
 0x2c2   :  { %1578 = vmatprep.subr.bf16.mxu1 %v1715_v14 }
 0x2c5   :  { %1579 = vmatpush3.bf16.msra.mxu1 %v1715_v14  ;;  %v1732_v14 = vld [vmem:[#allocation2 + $0x158] sm:$0xff]  }
 0x2c6   :  { %1580 = vmatprep.subr.bf16.mxu1 %v1716_v15 }
 0x2c9   :  { %1581 = vmatpush3.bf16.msra.mxu1 %v1716_v15  ;;  %v1733_v15 = vld [vmem:[#allocation2 + $0x160] sm:$0xff]  }
 0x2ca   :  { %1582 = vmatprep.subr.bf16.mxu1 %v1717_v16 }
 0x2cd   :  { %1583 = vmatpush3.bf16.msra.mxu1 %v1717_v16  ;;  %v1734_v16 = vld [vmem:[#allocation2 + $0x168] sm:$0xff]  }
 0x2ce   :  { %1584 = vmatprep.subr.bf16.mxu1 %v1718_v17 }
 0x2d1   :  { %1585 = vmatpush3.bf16.msra.mxu1 %v1718_v17 }
 0x2d2   :  { %1586 = vmatprep.subr.bf16.mxu1 %v1719_v24 }
 0x2d5   :  { %1587 = vmatpush3.bf16.msra.mxu1 %v1719_v24  ;;  %v1737_v24 = vld [vmem:[#allocation2 + $0x180] sm:$0xff]  }
 0x2d6   :  { %1588 = vmatprep.subr.bf16.mxu1 %v1720_v25 }
 0x2d9   :  { %1589 = vmatpush3.bf16.msra.mxu1 %v1720_v25  ;;  %v1738_v25 = vld [vmem:[#allocation2 + $0x188] sm:$0xff]  }
 0x2da   :  { %1602 = vmatprep.subr.bf16.mxu1 %v1721_v40 }
 0x38f   :  { %v1552_v18 = vpop.f32.mrb[4].mxu1 }
 0x390   :  { %v421_v19 = vpop.f32.mrb[5].mxu1 }
 0x391   :  { %v1553_v20 = vpop.f32.mrb[6].mxu1 }
 0x392   :  { %v437_v21 = vpack.c.bf16 %v1553_v20, %v1552_v18  ;;  %v424_v22 = vpop.f32.mrb[7].mxu1 }
 0x393   :  { %v436_v23 = vpack.c.bf16 %v424_v22, %v421_v19  ;;  %v1735_v22 = vld [vmem:[#allocation2 + $0x170] sm:$0xff]  }
 0x395   :  { %1570 = vmatprep.mubr.bf16.mxu0 %v436_v23  ;;  %v1736_v23 = vld [vmem:[#allocation2 + $0x178] sm:$0xff]  }
 0x396   :  { %1571 = vmatmul.mubr.bf16.vlgmr.msra.gmra.mrb[8].mxu0 %v437_v21 }
 0x397   :  { %1598 = vmatprep.mubr.msk.bf16.mxu0 %vm62_vm0, %v1842_v2 }
 0x469   :  { %v1572_v27 = vpop.f32.mrb[8].mxu0 }
 0x46a   :  { %v551_v28 = vadd.f32 %v1572_v27, %v1346_v26  ;;  %v542_v29 = vpop.f32.mrb[9].mxu0  ;;  %v1740_v27 = vld [vmem:[#allocation2 + $0x198] sm:$0xff]  }
 0x46b   :  { %v543_v30 = vadd.f32 %v1346_v26, %v542_v29  ;;  %v1573_v31 = vpop.f32.mrb[10].mxu0  ;;  %v1368_v29 = vld [vmem:[%s1918_s3 + $0x8] ss:$0 sm:$0xff] }
 0x46c   :  { %v554_v32 = vadd.f32 %v1573_v31, %v1346_v26  ;;  %v545_v33 = vpop.f32.mrb[11].mxu0  ;;  %v559_v35 = vmax.f32 %v551_v28, 0.0  ;;  %v1741_v28 = vld [vmem:[#allocation2 + $0x1a0] sm:$0xff]  }
 0x46d   :  { %v546_v34 = vadd.f32 %v1346_v26, %v545_v33  ;;  %v557_v36 = vmax.f32 %v543_v30, 0.0  ;;  %v1739_v26 = vld [vmem:[#allocation2 + $0x190] sm:$0xff]  }
 0x46e   :  { %v560_v2 = vmax.f32 %v554_v32, 0.0 }
 0x46f   :  { %v558_v37 = vmax.f32 %v546_v34, 0.0 }
 0x470   :  { %v562_v38 = vpack.c.bf16 %v560_v2, %v559_v35 }
 0x471   :  { %v561_v39 = vpack.c.bf16 %v558_v37, %v557_v36 }
 0x473   :  { %1590 = vmatprep.mubr.bf16.mxu1 %v561_v39 }
 0x474   :  { %1591 = vmatmul.mubr.bf16.vlgmr.msra.gmra.mrb[8].mxu1 %v562_v38 }
 0x475   :  { %1603 = vmatpush3.bf16.msra.mxu1 %v1721_v40 }
 0x476   :  { %1604 = vmatprep.subr.bf16.mxu1 %v1722_v41 }
 0x479   :  { %1605 = vmatpush3.bf16.msra.mxu1 %v1722_v41 }
 0x47a   :  { %1606 = vmatprep.subr.bf16.mxu1 %v1723_v42 }
 0x47d   :  { %1607 = vmatpush3.bf16.msra.mxu1 %v1723_v42 }
 0x47e   :  { %1608 = vmatprep.subr.bf16.mxu1 %v1724_v43 }
 0x481   :  { %1609 = vmatpush3.bf16.msra.mxu1 %v1724_v43  ;;  %v1742_v43 = vld [vmem:[#allocation2 + $0x1a8] sm:$0xff]  }
 0x482   :  { %1610 = vmatprep.subr.bf16.mxu1 %v1725_v44 }
 0x485   :  { %1611 = vmatpush3.bf16.msra.mxu1 %v1725_v44  ;;  %v1743_v44 = vld [vmem:[#allocation2 + $0x1b0] sm:$0xff]  }
 0x486   :  { %1612 = vmatprep.subr.bf16.mxu1 %v1726_v45 }
 0x489   :  { %1613 = vmatpush3.bf16.msra.mxu1 %v1726_v45  ;;  %v1744_v45 = vld [vmem:[#allocation2 + $0x1b8] sm:$0xff]  }
 0x48a   :  { %1614 = vmatprep.subr.bf16.mxu1 %v1727_v46 }
 0x48d   :  { %1615 = vmatpush3.bf16.msra.mxu1 %v1727_v46  ;;  %v1745_v46 = vld [vmem:[#allocation2 + $0x1c0] sm:$0xff]  }
 0x48e   :  { %1616 = vmatprep.subr.bf16.mxu1 %v1728_v10 }
 0x491   :  { %1617 = vmatpush3.bf16.msra.mxu1 %v1728_v10 }
 0x492   :  { %1642 = vmatprep.subr.bf16.mxu1 %v1737_v24 }
 0x547   :  { %v1592_v48 = vpop.f32.mrb[8].mxu1 }
 0x548   :  { %v676_v49 = vadd.f32 %v1592_v48, %v1355_v47  ;;  %v667_v50 = vpop.f32.mrb[9].mxu1  ;;  %v1747_v48 = vld [vmem:[#allocation2 + $0x1d0] sm:$0xff]  }
 0x549   :  { %v668_v52 = vadd.f32 %v1355_v47, %v667_v50  ;;  %v1593_v53 = vpop.f32.mrb[10].mxu1  ;;  %v1749_v50 = vld [vmem:[#allocation2 + $0x1e0] sm:$0xff]  }
 0x54a   :  { %v684_v54 = vmax.f32 %v676_v49, 0.0  ;;  %v679_v55 = vadd.f32 %v1593_v53, %v1355_v47  ;;  %v670_v56 = vpop.f32.mrb[11].mxu1  ;;  %v1748_v49 = vld [vmem:[#allocation2 + $0x1d8] sm:$0xff]  }
 0x54b   :  { %v682_v57 = vmax.f32 %v668_v52, 0.0  ;;  %v671_v58 = vadd.f32 %v1355_v47, %v670_v56  ;;  %v1746_v47 = vld [vmem:[#allocation2 + $0x1c8] sm:$0xff]  }
 0x54c   :  { %v693_v59 = vmul.f32 %v1364_v51, %v684_v54  ;;  %v685_v60 = vmax.f32 %v679_v55, 0.0  ;;  %v1377_v52 = vld [vmem:[%s1918_s3 + $0x9] ss:$0 sm:$0xff]  ;;  %v1386_v56 = vld [vmem:[%s1918_s3 + $0xa] ss:$0 sm:$0xff] }
 0x54d   :  { %v691_v62 = vmul.f32 %v1364_v51, %v682_v57  ;;  %v683_v63 = vmax.f32 %v671_v58, 0.0 }
 0x54e   :  { %v694_v0 = vmul.f32 %v1364_v51, %v685_v60  ;;  %v702_v3 = vadd.f32 %v1365_v61, %v693_v59 }
 0x54f   :  { %v692_v1 = vmul.f32 %v1364_v51, %v683_v63  ;;  %v700_v6 = vadd.f32 %v1365_v61, %v691_v62  ;;  %v1750_v51 = vld [vmem:[#allocation2 + $0x1e8] sm:$0xff]  }
 0x550   :  { %v703_v4 = vadd.f32 %v1365_v61, %v694_v0 }
 0x551   :  { %v701_v7 = vadd.f32 %v1365_v61, %v692_v1 }
 0x552   :  { %v705_v8 = vpack.c.bf16 %v703_v4, %v702_v3  ;;  %v1387_v3 = vld [vmem:[%s1918_s3 + $0xb] ss:$0 sm:$0xff] }
 0x553   :  { %v704_v9 = vpack.c.bf16 %v701_v7, %v700_v6 }
 0x555   :  { %1594 = vmatprep.subr.bf16.mxu0 %v704_v9 }
 0x556   :  { %1595 = vmatpush3.bf16.msra.mxu0 %v704_v9 }
 0x557   :  { %1596 = vmatprep.subr.bf16.mxu0 %v705_v8 }
 0x55a   :  { %1597 = vmatpush3.bf16.msra.mxu0 %v705_v8 }
 0x55b   :  { %1622 = vmatprep.subr.bf16.mxu0 %v1729_v11 }
 0x55d   :  { %1599 = vmatmul.mubr.msk.bf16.vlgmr.msra.gmra.mrb[12].mxu0 %vm62_vm0, %v1849_v5 }
 0x55e   :  { %1623 = vmatpush3.bf16.msra.mxu0 %v1729_v11 }
 0x55f   :  { %1624 = vmatprep.subr.bf16.mxu0 %v1730_v12 }
 0x562   :  { %1625 = vmatpush3.bf16.msra.mxu0 %v1730_v12 }
 0x563   :  { %1626 = vmatprep.subr.bf16.mxu0 %v1731_v13 }
 0x566   :  { %1627 = vmatpush3.bf16.msra.mxu0 %v1731_v13 }
 0x567   :  { %1628 = vmatprep.subr.bf16.mxu0 %v1732_v14 }
 0x56a   :  { %1629 = vmatpush3.bf16.msra.mxu0 %v1732_v14 }
 0x56b   :  { %1630 = vmatprep.subr.bf16.mxu0 %v1733_v15 }
 0x56e   :  { %1631 = vmatpush3.bf16.msra.mxu0 %v1733_v15  ;;  %v1751_v15 = vld [vmem:[#allocation2 + $0x1f0] sm:$0xff]  }
 0x56f   :  { %1632 = vmatprep.subr.bf16.mxu0 %v1734_v16 }
 0x572   :  { %1633 = vmatpush3.bf16.msra.mxu0 %v1734_v16  ;;  %v1752_v16 = vld [vmem:[#allocation2 + $0x1f8] sm:$0xff]  }
 0x573   :  { %1634 = vmatprep.subr.bf16.mxu0 %v1735_v22 }
 0x576   :  { %1635 = vmatpush3.bf16.msra.mxu0 %v1735_v22 }
 0x577   :  { %1636 = vmatprep.subr.bf16.mxu0 %v1736_v23 }
 0x57a   :  { %1637 = vmatpush3.bf16.msra.mxu0 %v1736_v23 }
 0x57b   :  { %1662 = vmatprep.subr.bf16.mxu0 %v1745_v46 }
 0x630   :  { %v1600_v5 = vpop.f32.mrb[12].mxu0 }
 0x631   :  { %v740_v17 = vpop.f32.mrb[13].mxu0 }
 0x632   :  { %v1601_v18 = vpop.f32.mrb[14].mxu0 }
 0x633   :  { %v756_v19 = vpack.c.bf16 %v1601_v18, %v1600_v5  ;;  %v743_v20 = vpop.f32.mrb[15].mxu0  ;;  %v1388_v5 = vld [vmem:[%s1918_s3 + $0xc] ss:$0 sm:$0xff] }
 0x634   :  { %v755_v21 = vpack.c.bf16 %v743_v20, %v740_v17 }
 0x636   :  { %1618 = vmatprep.mubr.bf16.mxu1 %v755_v21 }
 0x637   :  { %1619 = vmatmul.mubr.bf16.vlgmr.msra.gmra.mrb[12].mxu1 %v756_v19 }
 0x638   :  { %1643 = vmatpush3.bf16.msra.mxu1 %v1737_v24 }
 0x639   :  { %1644 = vmatprep.subr.bf16.mxu1 %v1738_v25 }
 0x63c   :  { %1645 = vmatpush3.bf16.msra.mxu1 %v1738_v25 }
 0x63d   :  { %1646 = vmatprep.subr.bf16.mxu1 %v1739_v26 }
 0x640   :  { %1647 = vmatpush3.bf16.msra.mxu1 %v1739_v26 }
 0x641   :  { %1648 = vmatprep.subr.bf16.mxu1 %v1740_v27 }
 0x644   :  { %1649 = vmatpush3.bf16.msra.mxu1 %v1740_v27 }
 0x645   :  { %1650 = vmatprep.subr.bf16.mxu1 %v1741_v28 }
 0x648   :  { %1651 = vmatpush3.bf16.msra.mxu1 %v1741_v28 }
 0x649   :  { %1652 = vmatprep.subr.bf16.mxu1 %v1742_v43 }
 0x64c   :  { %1653 = vmatpush3.bf16.msra.mxu1 %v1742_v43 }
 0x64d   :  { %1654 = vmatprep.subr.bf16.mxu1 %v1743_v44 }
 0x650   :  { %1655 = vmatpush3.bf16.msra.mxu1 %v1743_v44 }
 0x651   :  { %1656 = vmatprep.subr.bf16.mxu1 %v1744_v45 }
 0x654   :  { %1657 = vmatpush3.bf16.msra.mxu1 %v1744_v45 }
 0x70a   :  { %v1620_v30 = vpop.f32.mrb[12].mxu1 }
 0x70b   :  { %v870_v31 = vadd.f32 %v1620_v30, %v1368_v29  ;;  %v861_v32 = vpop.f32.mrb[13].mxu1 }
 0x70c   :  { %v862_v33 = vadd.f32 %v1368_v29, %v861_v32  ;;  %v1621_v34 = vpop.f32.mrb[14].mxu1 }
 0x70d   :  { %v873_v35 = vadd.f32 %v1621_v34, %v1368_v29  ;;  %v864_v2 = vpop.f32.mrb[15].mxu1  ;;  %v878_v37 = vmax.f32 %v870_v31, 0.0  ;;  %v1397_v31 = vld [vmem:[%s1918_s3 + $0xd] ss:$0 sm:$0xff] }
 0x70e   :  { %v865_v36 = vadd.f32 %v1368_v29, %v864_v2  ;;  %v876_v39 = vmax.f32 %v862_v33, 0.0 }
 0x70f   :  { %v879_v38 = vmax.f32 %v873_v35, 0.0 }
 0x710   :  { %v877_v40 = vmax.f32 %v865_v36, 0.0 }
 0x711   :  { %v881_v41 = vpack.c.bf16 %v879_v38, %v878_v37 }
 0x712   :  { %v880_v42 = vpack.c.bf16 %v877_v40, %v876_v39 }
 0x714   :  { %1638 = vmatprep.mubr.bf16.mxu0 %v880_v42 }
 0x715   :  { %1639 = vmatmul.mubr.bf16.vlgmr.msra.gmra.mrb[16].mxu0 %v881_v41 }
 0x716   :  { %1663 = vmatpush3.bf16.msra.mxu0 %v1745_v46 }
 0x717   :  { %1664 = vmatprep.subr.bf16.mxu0 %v1746_v47 }
 0x71a   :  { %1665 = vmatpush3.bf16.msra.mxu0 %v1746_v47 }
 0x71b   :  { %1666 = vmatprep.subr.bf16.mxu0 %v1747_v48 }
 0x71e   :  { %1667 = vmatpush3.bf16.msra.mxu0 %v1747_v48 }
 0x71f   :  { %1668 = vmatprep.subr.bf16.mxu0 %v1748_v49 }
 0x722   :  { %1669 = vmatpush3.bf16.msra.mxu0 %v1748_v49 }
 0x723   :  { %1670 = vmatprep.subr.bf16.mxu0 %v1749_v50 }
 0x726   :  { %1671 = vmatpush3.bf16.msra.mxu0 %v1749_v50 }
 0x727   :  { %1672 = vmatprep.subr.bf16.mxu0 %v1750_v51 }
 0x72a   :  { %1673 = vmatpush3.bf16.msra.mxu0 %v1750_v51 }
 0x72b   :  { %1674 = vmatprep.subr.bf16.mxu0 %v1751_v15 }
 0x72e   :  { %1675 = vmatpush3.bf16.msra.mxu0 %v1751_v15 }
 0x72f   :  { %1676 = vmatprep.subr.bf16.mxu0 %v1752_v16 }
 0x732   :  { %1677 = vmatpush3.bf16.msra.mxu0 %v1752_v16 }
 0x7e8   :  { %v1640_v53 = vpop.f32.mrb[16].mxu0 }
 0x7e9   :  { %v995_v54 = vadd.f32 %v1640_v53, %v1377_v52  ;;  %v986_v55 = vpop.f32.mrb[17].mxu0 }
 0x7ea   :  { %v987_v57 = vadd.f32 %v1377_v52, %v986_v55  ;;  %v1641_v58 = vpop.f32.mrb[18].mxu0 }
 0x7eb   :  { %v1003_v59 = vmax.f32 %v995_v54, 0.0  ;;  %v998_v60 = vadd.f32 %v1641_v58, %v1377_v52  ;;  %v989_v61 = vpop.f32.mrb[19].mxu0 }
 0x7ec   :  { %v1001_v62 = vmax.f32 %v987_v57, 0.0  ;;  %v990_v63 = vadd.f32 %v1377_v52, %v989_v61 }
 0x7ed   :  { %v1012_v0 = vmul.f32 %v1386_v56, %v1003_v59  ;;  %v1004_v1 = vmax.f32 %v998_v60, 0.0 }
 0x7ee   :  { %v1010_v4 = vmul.f32 %v1386_v56, %v1001_v62  ;;  %v1002_v6 = vmax.f32 %v990_v63, 0.0 }
 0x7ef   :  { %v1013_v7 = vmul.f32 %v1386_v56, %v1004_v1  ;;  %v1021_v9 = vadd.f32 %v1387_v3, %v1012_v0 }
 0x7f0   :  { %v1011_v8 = vmul.f32 %v1386_v56, %v1002_v6  ;;  %v1019_v11 = vadd.f32 %v1387_v3, %v1010_v4 }
 0x7f1   :  { %v1022_v10 = vadd.f32 %v1387_v3, %v1013_v7 }
 0x7f2   :  { %v1020_v12 = vadd.f32 %v1387_v3, %v1011_v8 }
 0x7f3   :  { %v1024_v13 = vpack.c.bf16 %v1022_v10, %v1021_v9 }
 0x7f4   :  { %v1023_v14 = vpack.c.bf16 %v1020_v12, %v1019_v11 }
 0x7f6   :  { %1658 = vmatprep.mubr.bf16.mxu1 %v1023_v14 }
 0x7f7   :  { %1659 = vmatmul.mubr.bf16.vlgmr.msra.gmra.mrb[16].mxu1 %v1024_v13 }
 0x8ca   :  { %v1660_v17 = vpop.f32.mrb[16].mxu1 }
 0x8cb   :  { %v1138_v18 = vadd.f32 %v1660_v17, %v1388_v5  ;;  %v1129_v19 = vpop.f32.mrb[17].mxu1 }
 0x8cc   :  { %v1130_v20 = vadd.f32 %v1388_v5, %v1129_v19  ;;  %v1661_v21 = vpop.f32.mrb[18].mxu1 }
 0x8cd   :  { %v1141_v22 = vadd.f32 %v1661_v21, %v1388_v5  ;;  %v1132_v23 = vpop.f32.mrb[19].mxu1  ;;  %v1146_v25 = vmax.f32 %v1138_v18, 0.0 }
 0x8ce   :  { %v1133_v24 = vadd.f32 %v1388_v5, %v1132_v23  ;;  %v1144_v27 = vmax.f32 %v1130_v20, 0.0 }
 0x8cf   :  { %v1147_v26 = vmax.f32 %v1141_v22, 0.0 }
 0x8d0   :  { %v1145_v28 = vmax.f32 %v1133_v24, 0.0 }
 0x8d1   :  { %v1149_v29 = vpack.c.bf16 %v1147_v26, %v1146_v25 }
 0x8d2   :  { %v1148_v30 = vpack.c.bf16 %v1145_v28, %v1144_v27 }
 0x8d4   :  { %1678 = vmatprep.mubr.bf16.mxu0 %v1148_v30 }
 0x8d5   :  { %1679 = vmatmul.mubr.bf16.vlgmr.msra.gmra.mrb[20].mxu0 %v1149_v29 }
 0x9a8   :  { %v1680_v32 = vpop.f32.mrb[20].mxu0 }
 0x9a9   :  { %v1263_v33 = vadd.f32 %v1680_v32, %v1397_v31  ;;  %v1254_v34 = vpop.f32.mrb[21].mxu0 }
 0x9aa   :  { %v1255_v35 = vadd.f32 %v1397_v31, %v1254_v34  ;;  %v1681_v2 = vpop.f32.mrb[22].mxu0 }
 0x9ab   :  { %1273 = vmax.xlane.f32.xlu1 %v1263_v33  ;;  %v1257_v36 = vpop.f32.mrb[23].mxu0  ;;  %v1266_v37 = vadd.f32 %v1681_v2, %v1397_v31 }
 0x9ac   :  { %1269 = vmax.xlane.f32.xlu0 %v1255_v35  ;;  %v1258_v38 = vadd.f32 %v1397_v31, %v1257_v36 }
 0x9af   :  { %1275 = vmax.xlane.f32.xlu1 %v1266_v37 }
 0x9b0   :  { %1271 = vmax.xlane.f32.xlu0 %v1258_v38 }
 0xa38   :  { %v1274_v39 = vpop.xlane.xlu1 %1273 }
 0xa39   :  { %v1279_v40 = vsub.f32 %v1263_v33, %v1274_v39  ;;  %v1270_v41 = vpop.xlane.xlu0 %1269 }
 0xa3a   :  { %v1277_v42 = vsub.f32 %v1255_v35, %v1270_v41 }
 0xa3b   :  { %v1285_v45 = vmul.f32 1.442695, %v1279_v40 }
 0xa3c   :  { %v1281_v43 = vmul.f32 1.442695, %v1277_v42  ;;  %v1276_v44 = vpop.xlane.xlu1 %1275 }
 0xa3d   :  { %v1272_v46 = vpop.xlane.xlu0 %1271  ;;  %v1280_v47 = vsub.f32 %v1266_v37, %v1276_v44 }
 0xa3e   :  { %1753 = vpow2.f32 %v1281_v43  ;;  %v1278_v48 = vsub.f32 %v1258_v38, %v1272_v46 }
 0xa3f   :  { %1755 = vpow2.f32 %v1285_v45  ;;  %v1287_v50 = vmul.f32 1.442695, %v1280_v47 }
 0xa40   :  { %v1283_v49 = vmul.f32 1.442695, %v1278_v48 }
 0xa42   :  { %1757 = vpow2.f32 %v1283_v49 }
 0xa43   :  { %1759 = vpow2.f32 %v1287_v50 }
 0xa48   :  { %v1754_v51 = vpop.eup %1753 }
 0xa49   :  { %1289 = vadd.xlane.f32.xlu0 %v1754_v51  ;;  %v1756_v52 = vpop.eup %1755 }
 0xa4c   :  { %v1758_v53 = vpop.eup %1757 }
 0xa4d   :  { %1293 = vadd.xlane.f32.xlu0 %v1756_v52  ;;  %1291 = vadd.xlane.f32.xlu1 %v1758_v53  ;;  %v1760_v54 = vpop.eup %1759 }
 0xa51   :  { %1295 = vadd.xlane.f32.xlu1 %v1760_v54 }
 0xad6   :  { %v1290_v55 = vpop.xlane.xlu0 %1289 }
 0xad7   :  { %1761 = vlog2.f32 %v1290_v55 }
 0xada   :  { %v1292_v56 = vpop.xlane.xlu1 %1291  ;;  %v1294_v57 = vpop.xlane.xlu0 %1293 }
 0xadb   :  { %1763 = vlog2.f32 %v1292_v56 }
 0xadc   :  { %1765 = vlog2.f32 %v1294_v57 }
 0xade   :  { %v1296_v58 = vpop.xlane.xlu1 %1295 }
 0xadf   :  { %1767 = vlog2.f32 %v1296_v58 }
 0xae1   :  { %v1762_v59 = vpop.eup %1761 }
 0xae2   :  { %v1298_v60 = vmul.f32 0.6931472, %v1762_v59 }
 0xae4   :  { %v1305_v61 = vsub.f32 %v1277_v42, %v1298_v60 }
 0xae5   :  { %v1764_v62 = vpop.eup %1763 }
 0xae6   :  { %v1766_v63 = vpop.eup %1765  ;;  %1309 = vst [vmem:[%s1919_s4] sm:$0xff] %v1305_v61  ;;  %v1300_v0 = vmul.f32 0.6931472, %v1764_v62 }
 0xae7   :  { %v1302_v1 = vmul.f32 0.6931472, %v1766_v63 }
 0xae8   :  { %v1306_v3 = vsub.f32 %v1278_v48, %v1300_v0 }
 0xae9   :  { %v1768_v4 = vpop.eup %1767  ;;  %v1307_v6 = vsub.f32 %v1279_v40, %v1302_v1 }
 0xaea   :  { %1310 = vst [vmem:[%s1919_s4 + $0x8] sm:$0xff] %v1306_v3  ;;  %v1304_v7 = vmul.f32 0.6931472, %v1768_v4 }
 0xaeb   :  { %1311 = vst [vmem:[%s1919_s4 + $0x10] sm:$0xff] %v1307_v6 }
 0xaec   :  { %v1308_v8 = vsub.f32 %v1280_v47, %v1304_v7 }
 0xaee   :  { %1312 = vst [vmem:[%s1919_s4 + $0x18] sm:$0xff] %v1308_v8 }
 0xaef   :  { %1317 = vsyncpa [#allocation3], 1 }

</bundles_post_ra>
